<compile_context>
chip_gen: v7x
topology: tpu7x:2x2x1
jax: 0.10.0
libtpu: 0.0.40
codegen_flags: <defaults>
</compile_context>

<pallas_src>
import functools

import jax
import jax.numpy as jnp
from jax.experimental import pallas as pl
from jax.experimental.pallas import tpu as pltpu

LANE = 128
SUBLANE = 8


def _round_up(x, m):
    return (x + m - 1) // m * m


def decoder20_kernel(x_ref, w1_ref, b1_ref, w2_ref, b2_ref, o_ref):
    # Layer 1: bf16 MXU matmul, f32 accumulate, bias + ReLU on the VPU (f32:
    # v5e has no bf16 VPU/EUP).
    x = x_ref[...].astype(jnp.bfloat16)
    h = jnp.dot(x, w1_ref[...], preferred_element_type=jnp.float32)
    h = jnp.maximum(h + b1_ref[...], 0.0)
    # Layer 2: feed MXU bf16 again, f32 accumulate.
    y = jnp.dot(h.astype(jnp.bfloat16), w2_ref[...],
                preferred_element_type=jnp.float32)
    y = y + b2_ref[...]
    # Exact sigmoid: exp on the EUP; exact divide keeps outputs in [0, 1]
    # (approx reciprocal can overshoot 1.0) and is free in this HBM-bound kernel.
    o_ref[...] = (1.0 / (1.0 + jnp.exp(-y))).astype(o_ref.dtype)


def prepare_params(w1, b1, w2, b2):
    """One-time parameter prep (hoisted out of the forward path).

    Casts weights to bf16 and pads only the hidden dim to 128 lanes so both
    matmuls see a clean contraction/output layout.  Padded rows/cols are zero,
    which is mathematically inert (ReLU(0)=0 contributes nothing to layer 2).
    """
    K, H = w1.shape
    N = w2.shape[1]
    H_pad = _round_up(H, LANE)
    w1p = jnp.zeros((K, H_pad), jnp.bfloat16).at[:, :H].set(w1.astype(jnp.bfloat16))
    b1p = jnp.zeros((1, H_pad), jnp.float32).at[:, :H].set(
        b1.reshape(1, H).astype(jnp.float32))
    w2p = jnp.zeros((H_pad, N), jnp.bfloat16).at[:H, :].set(w2.astype(jnp.bfloat16))
    b2p = b2.reshape(1, N).astype(jnp.float32)
    return w1p, b1p, w2p, b2p


@functools.partial(jax.jit, static_argnames=("tb",))
def decoder20_forward(x, w1p, b1p, w2p, b2p, *, tb=1024):
    """x: (B, code_dim) f32; params from prepare_params(). Returns (B, num_inputs) bf16."""
    B, K = x.shape
    H_pad = w1p.shape[1]
    N = w2p.shape[1]

    # Adaptive batch tiling: never pad B by more than one sublane-rounded tile.
    grid = pl.cdiv(B, tb)
    TB = _round_up(pl.cdiv(B, grid), SUBLANE)
    B_pad = grid * TB
    if B_pad != B:
        x = jnp.zeros((B_pad, K), x.dtype).at[:B].set(x)

    out = pl.pallas_call(
        decoder20_kernel,
        out_shape=jax.ShapeDtypeStruct((B_pad, N), jnp.bfloat16),
        grid=(grid,),
        in_specs=[
            pl.BlockSpec((TB, K), lambda i: (i, 0)),       # x: tiled over batch, K unpadded
            pl.BlockSpec((K, H_pad), lambda i: (0, 0)),    # W1: VMEM-resident across steps
            pl.BlockSpec((1, H_pad), lambda i: (0, 0)),    # b1
            pl.BlockSpec((H_pad, N), lambda i: (0, 0)),    # W2: VMEM-resident across steps
            pl.BlockSpec((1, N), lambda i: (0, 0)),        # b2
        ],
        out_specs=pl.BlockSpec((TB, N), lambda i: (i, 0)), # unpadded N, bf16 store
        compiler_params=pltpu.CompilerParams(
            dimension_semantics=("parallel",)),            # megacore-shardable on v7x
    )(x, w1p, b1p, w2p, b2p)

    return out if B_pad == B else out[:B]


def xavier_uniform(key, fan_in, fan_out, dtype=jnp.float32):
    # Matches nn.init.xavier_uniform_ (gain=1): U(-a, a), a = sqrt(6/(fan_in+fan_out))
    a = jnp.sqrt(6.0 / (fan_in + fan_out))
    return jax.random.uniform(key, (fan_in, fan_out), dtype=dtype, minval=-a, maxval=a)


def make_params(key, code_dim, num_inputs):
    k1, k2 = jax.random.split(key)
    w1 = xavier_uniform(k1, code_dim, 20)            # Linear(code_dim, 20), stored (in, out)
    b1 = jnp.full((1, 20), 0.01, jnp.float32)        # bias filled with 0.01
    w2 = xavier_uniform(k2, 20, num_inputs)          # Linear(20, num_inputs)
    b2 = jnp.full((1, num_inputs), 0.01, jnp.float32)
    return w1, b1, w2, b2


def reference_forward(x, w1, b1, w2, b2):
    h = jnp.maximum(x @ w1 + b1, 0.0)
    return jax.nn.sigmoid(h @ w2 + b2)


if __name__ == "__main__":
    key = jax.random.PRNGKey(0)
    k_x, k_p = jax.random.split(key)

    batch, code_dim, num_inputs = 8, 8, 32
    x = jax.random.normal(k_x, (batch, code_dim), dtype=jnp.float32)
    w1, b1, w2, b2 = make_params(k_p, code_dim, num_inputs)

    # One-time parameter preparation (hoisted out of the forward path).
    w1p, b1p, w2p, b2p = prepare_params(w1, b1, w2, b2)

    out = decoder20_forward(x, w1p, b1p, w2p, b2p)
    out = jax.block_until_ready(out)

    ref = reference_forward(x, w1, b1, w2, b2)
    assert out.shape == (batch, num_inputs)
    # bf16 MXU inputs + bf16 output -> slightly looser tolerance vs f32 reference.
    assert jnp.allclose(out.astype(jnp.float32), ref, atol=2e-2, rtol=0.0), \
        "mismatch vs reference"
    # Exact sigmoid: outputs must stay within [0, 1].
    assert float(out.max()) <= 1.0 and float(out.min()) >= 0.0
    print("KERNEL_OK")
</pallas_src>

<mosaic_0001>
module attributes {stable_mosaic.version = 11 : i64} {
  func.func @decoder20_kernel(%arg0: i32, %arg1: memref<8x8xf32, #tpu.memory_space<vmem>>, %arg2: memref<8x128xbf16, #tpu.memory_space<vmem>>, %arg3: memref<1x128xf32, #tpu.memory_space<vmem>>, %arg4: memref<128x32xbf16, #tpu.memory_space<vmem>>, %arg5: memref<1x32xf32, #tpu.memory_space<vmem>>, %arg6: memref<8x32xbf16, #tpu.memory_space<vmem>>) attributes {dimension_semantics = [#tpu.dimension_semantics<parallel>], iteration_bounds = array<i64: 1>, scalar_prefetch = 0 : i64, scratch_operands = 0 : i64, tpu.core_type = #tpu.core_type<tc>, window_params = [{transform_indices = @transform_0, window_bounds = array<i64: 8, 8>}, {pipeline_mode = #tpu.pipeline_mode<synchronous>, transform_indices = @transform_1, window_bounds = array<i64: 8, 128>}, {pipeline_mode = #tpu.pipeline_mode<synchronous>, transform_indices = @transform_2, window_bounds = array<i64: 1, 128>}, {pipeline_mode = #tpu.pipeline_mode<synchronous>, transform_indices = @transform_3, window_bounds = array<i64: 128, 32>}, {pipeline_mode = #tpu.pipeline_mode<synchronous>, transform_indices = @transform_4, window_bounds = array<i64: 1, 32>}, {transform_indices = @transform_5, window_bounds = array<i64: 8, 32>}]} {
    %c0 = arith.constant 0 : index
    %c0_0 = arith.constant 0 : index
    %0 = vector.load %arg1[%c0, %c0_0] : memref<8x8xf32, #tpu.memory_space<vmem>>, vector<8x8xf32>
    %1 = arith.truncf %0 : vector<8x8xf32> to vector<8x8xbf16>
    %c0_1 = arith.constant 0 : index
    %c0_2 = arith.constant 0 : index
    %2 = vector.load %arg2[%c0_1, %c0_2] : memref<8x128xbf16, #tpu.memory_space<vmem>>, vector<8x128xbf16>
    %cst = arith.constant dense<0.000000e+00> : vector<8x128xf32>
    %3 = tpu.matmul %1, %2, %cst {dimension_numbers = #tpu.dot_dimension_numbers<[1], [0], [0], [1], [0, 0, 1, 1], [], []>} : vector<8x8xbf16>, vector<8x128xbf16>, vector<8x128xf32> -> vector<8x128xf32>
    %c0_3 = arith.constant 0 : index
    %c0_4 = arith.constant 0 : index
    %4 = vector.load %arg3[%c0_3, %c0_4] : memref<1x128xf32, #tpu.memory_space<vmem>>, vector<1x128xf32>
    %5 = vector.broadcast %4 : vector<1x128xf32> to vector<8x128xf32>
    %6 = arith.addf %3, %5 : vector<8x128xf32>
    %cst_5 = arith.constant 0.000000e+00 : f32
    %7 = vector.broadcast %cst_5 : f32 to vector<8x128xf32>
    %8 = arith.maximumf %6, %7 : vector<8x128xf32>
    %9 = arith.truncf %8 : vector<8x128xf32> to vector<8x128xbf16>
    %c0_6 = arith.constant 0 : index
    %c0_7 = arith.constant 0 : index
    %10 = vector.load %arg4[%c0_6, %c0_7] : memref<128x32xbf16, #tpu.memory_space<vmem>>, vector<128x32xbf16>
    %cst_8 = arith.constant dense<0.000000e+00> : vector<8x32xf32>
    %11 = tpu.matmul %9, %10, %cst_8 {dimension_numbers = #tpu.dot_dimension_numbers<[1], [0], [0], [1], [0, 0, 1, 1], [], []>} : vector<8x128xbf16>, vector<128x32xbf16>, vector<8x32xf32> -> vector<8x32xf32>
    %c0_9 = arith.constant 0 : index
    %c0_10 = arith.constant 0 : index
    %12 = vector.load %arg5[%c0_9, %c0_10] : memref<1x32xf32, #tpu.memory_space<vmem>>, vector<1x32xf32>
    %13 = vector.broadcast %12 : vector<1x32xf32> to vector<8x32xf32>
    %14 = arith.addf %11, %13 : vector<8x32xf32>
    %cst_11 = arith.constant 0.000000e+00 : f32
    %15 = vector.broadcast %cst_11 : f32 to vector<8x32xf32>
    %16 = arith.subf %15, %14 : vector<8x32xf32>
    %17 = math.exp %16 : vector<8x32xf32>
    %cst_12 = arith.constant 1.000000e+00 : f32
    %18 = vector.broadcast %cst_12 : f32 to vector<8x32xf32>
    %19 = arith.addf %18, %17 : vector<8x32xf32>
    %cst_13 = arith.constant 1.000000e+00 : f32
    %20 = vector.broadcast %cst_13 : f32 to vector<8x32xf32>
    %21 = arith.divf %20, %19 : vector<8x32xf32>
    %22 = arith.truncf %21 : vector<8x32xf32> to vector<8x32xbf16>
    %c0_14 = arith.constant 0 : index
    %c0_15 = arith.constant 0 : index
    %23 = vector.load %arg6[%c0_14, %c0_15] : memref<8x32xbf16, #tpu.memory_space<vmem>>, vector<8x32xbf16>
    tpu.vector_store %arg6[%c0_14, %c0_15], %22 {strides = array<i32>} : memref<8x32xbf16, #tpu.memory_space<vmem>>, vector<8x32xbf16>,
    return
  }
  func.func @transform_0(%arg0: i32) -> (i32, i32) {
    %c0_i32 = arith.constant 0 : i32
    %c0_i32_0 = arith.constant 0 : i32
    return %arg0, %c0_i32 : i32, i32
  }
  func.func @transform_1(%arg0: i32) -> (i32, i32) {
    %c0_i32 = arith.constant 0 : i32
    %c0_i32_0 = arith.constant 0 : i32
    %c0_i32_1 = arith.constant 0 : i32
    return %c0_i32, %c0_i32_0 : i32, i32
  }
  func.func @transform_2(%arg0: i32) -> (i32, i32) {
    %c0_i32 = arith.constant 0 : i32
    %c0_i32_0 = arith.constant 0 : i32
    %c0_i32_1 = arith.constant 0 : i32
    return %c0_i32, %c0_i32_0 : i32, i32
  }
  func.func @transform_3(%arg0: i32) -> (i32, i32) {
    %c0_i32 = arith.constant 0 : i32
    %c0_i32_0 = arith.constant 0 : i32
    %c0_i32_1 = arith.constant 0 : i32
    return %c0_i32, %c0_i32_0 : i32, i32
  }
  func.func @transform_4(%arg0: i32) -> (i32, i32) {
    %c0_i32 = arith.constant 0 : i32
    %c0_i32_0 = arith.constant 0 : i32
    %c0_i32_1 = arith.constant 0 : i32
    return %c0_i32, %c0_i32_0 : i32, i32
  }
  func.func @transform_5(%arg0: i32) -> (i32, i32) {
    %c0_i32 = arith.constant 0 : i32
    %c0_i32_0 = arith.constant 0 : i32
    return %arg0, %c0_i32 : i32, i32
  }
}

</mosaic_0001>

<bundles_post_ra>
// kernel: decoder20_forward.1
= control target key start
LH: loop header
LB: loop body
LE: loop exit
PB: predicated region body
PF: predicated region fallthrough
CT: control target
= control target key end

     0   :  { %vm36_vm0 = vcmask 1043456   ;;  %v303_v2 = vmov 0.0   ;;  %vm304_vm1 = vmmov 0   ;;  %vm32_vm2 = vcmask 64512   ;;  %s384_s0 = inlined_call_operand.vmem [shape: f32[8,8], index: 0, kind: input, shape index: {}]   ;;  %s385_s1 = inlined_call_operand.vmem [shape: bf16[8,128], index: 1, kind: input, shape index: {}]   ;;  %s386_s2 = inlined_call_operand.vmem [shape: f32[1,128], index: 2, kind: input, shape index: {}]   ;;  %s387_s3 = inlined_call_operand.vmem [shape: bf16[128,32], index: 3, kind: input, shape index: {}]   ;;  %s388_s4 = inlined_call_operand.vmem [shape: f32[1,32], index: 4, kind: input, shape index: {}]   ;;  %s389_s5 = inlined_call_operand.hbm [shape: bf16[8,32], index: 5, kind: output, shape index: {}]  }
   0x1   :  { %v24_v0 = vld [vmem:[%s385_s1] sm:$0xf]  ;;  %238 = vmatprep.subr.bf16.mxu0 %v303_v2  ;;  %240 = vmatprep.mubr.msk.bf16.mxu0 %vm304_vm1, %v303_v2  ;;  %v268_v6 = vld [vmem:[%s387_s3 + $0x8] sm:$0xff]   ;;  %v269_v7 = vld [vmem:[%s387_s3 + $0x10] sm:$0xff]  }
   0x2   :  { %v22_v1 = vld [vmem:[%s384_s0] sm:$0xff]  ;;  %v38_v3 = vsel %vm36_vm0, %v24_v0, 0  ;;  %244 = vmatprep.subr.bf16.mxu1 %v303_v2  ;;  %260 = vmatprep.mubr.msk.bf16.mxu1 %vm304_vm1, %v303_v2 }
   0x3   :  { %v23_v4 = vpack.c.bf16 %v22_v1, %v22_v1  ;;  %239 = vmatpush3.bf16.msra.mxu0 %v38_v3  ;;  %v267_v5 = vld [vmem:[%s387_s3] sm:$0xff]  }
   0x4   :  { %245 = vmatpush3.bf16.msra.mxu1 %v267_v5 }
   0x5   :  { %246 = vmatprep.subr.bf16.mxu1 %v303_v2 }
   0x6   :  { %241 = vmatmul.mubr.msk.bf16.vlgmr.msra.gmra.mrb[0].mxu0 %vm32_vm2, %v23_v4 }
   0x8   :  { %247 = vmatpush3.bf16.msra.mxu1 %v268_v6 }
   0x9   :  { %248 = vmatprep.subr.bf16.mxu1 %v303_v2 }
   0xa   :  { %10 = vsyncpa [#allocation3], 0  ;;  %v270_v8 = vld [vmem:[%s387_s3 + $0x18] sm:$0xff]   ;;  %v271_v9 = vld [vmem:[%s387_s3 + $0x20] sm:$0xff]   ;;  %vm200_vm3 = vcmask 257024  }
   0xb   :  { %v272_v10 = vld [vmem:[%s387_s3 + $0x28] sm:$0xff]   ;;  %v273_v11 = vld [vmem:[%s387_s3 + $0x30] sm:$0xff]   ;;  %v274_v12 = vld [vmem:[%s387_s3 + $0x38] sm:$0xff]  }
   0xc   :  { %249 = vmatpush3.bf16.msra.mxu1 %v269_v7  ;;  %v216_v13 = vld [vmem:[%s386_s2] ss:$0 sm:$0xff]  ;;  %s305_s2 = smov [#allocation2]  }
   0xd   :  { %250 = vmatprep.subr.bf16.mxu1 %v303_v2  ;;  %v218_v21 = vld [vmem:[%s388_s4] ss:$0 sm:$0xff]  ;;  %s208_s3 = sshll.u32 %s305_s2, 4  ;;  %s209_s3 = int_to_ptr.vmem [resolvable:$true] %s208_s3 }
   0xe   :  { %s279_s15 = scalar_lea.vmem %s209_s3, 64  ;;  %p284_p1 = scmp.lt.s32.totalorder %s209_s3, %s209_s3 }
   0xf   :  { %p280_p0 = scmp.ne.s32.totalorder %s209_s3, %s279_s15  ;;  %p285_p2 = scmp.lt.s32.totalorder %s279_s15, %s279_s15 }
  0x10   :  { %251 = vmatpush3.bf16.msra.mxu1 %v270_v8 }
  0x11   :  { %252 = vmatprep.subr.bf16.mxu1 %v303_v2  ;;  %p286_p3 = por %p285_p2, %p284_p1 }
  0x13   :  { %p287_p4 = pnand %p286_p3, %p280_p0 }
  0x14   :  { %253 = vmatpush3.bf16.msra.mxu1 %v271_v9 }
  0x15   :  { %254 = vmatprep.subr.bf16.mxu1 %v303_v2 }
  0x18   :  { %255 = vmatpush3.bf16.msra.mxu1 %v272_v10 }
  0x19   :  { %256 = vmatprep.subr.bf16.mxu1 %v303_v2 }
  0x1c   :  { %257 = vmatpush3.bf16.msra.mxu1 %v273_v11 }
  0x1d   :  { %258 = vmatprep.subr.bf16.mxu1 %v303_v2 }
  0x20   :  { %259 = vmatpush3.bf16.msra.mxu1 %v274_v12 }
  0xd9   :  { %v74_v14 = vpop.f32.mrb[0].mxu0 }
  0xda   :  { %v75_v15 = vadd.f32 %v216_v13, %v74_v14  ;;  %v242_v16 = vpop.f32.mrb[1].mxu0 }
  0xdb   :  { %v77_v17 = vpop.f32.mrb[2].mxu0 }
  0xdc   :  { %v80_v18 = vmax.f32 %v75_v15, 0.0  ;;  %v243_v19 = vpop.f32.mrb[3].mxu0 }
  0xde   :  { %v81_v20 = vpack.c.bf16 %v80_v18, %v80_v18 }
  0xe0   :  { %261 = vmatmul.mubr.bf16.vlgmr.msra.gmra.mrb[0].mxu1 %v81_v20 }
 0x1b3   :  { %v187_v22 = vpop.f32.mrb[0].mxu1 }
 0x1b4   :  { %v188_v23 = vadd.f32 %v218_v21, %v187_v22  ;;  %v262_v24 = vpop.f32.mrb[1].mxu1 }
 0x1b5   :  { %v190_v25 = vpop.f32.mrb[2].mxu1 }
 0x1b6   :  { %v193_v26 = vsub.f32 0.0, %v188_v23  ;;  %v263_v27 = vpop.f32.mrb[3].mxu1 }
 0x1b8   :  { %v194_v28 = vmul.f32 1.442695, %v193_v26 }
 0x1ba   :  { %275 = vpow2.f32 %v194_v28 }
 0x1c4   :  { %v276_v29 = vpop.eup %275 }
 0x1c5   :  { %v196_v30 = vadd.f32 1.0, %v276_v29 }
 0x1c7   :  { %277 = vrcp.f32 %v196_v30 }
 0x1d1   :  { %v278_v31 = vpop.eup %277 }
 0x1d2   :  { %v199_v32 = vpack.c.bf16 %v278_v31, %v278_v31 }
 0x1d4   :  { %201 = vst.msk [vmem:[#allocation2] sm:$0xf] %vm200_vm3, %v199_v32 }
 0x1d5   :  { %290 = shalt.err (!%p287_p4)
}
 0x1d6   :  { %s291_s17 = scalar_lea.hbm %s389_s5, 64 }
 0x1d7   :  { %p292_p5 = scmp.ne.s32.totalorder %s389_s5, %s291_s17  ;;  %p295_p6 = scmp.lt.u32.totalorder %s291_s17, %s389_s5 }
 0x1d9   :  { %p297_p7 = pnand %p295_p6, %p292_p5 }
 0x1db   :  { %300 = shalt.err (!%p297_p7)
}
 0x1dc   :  { %211 = dma.vmem_to_hbm [thread:$0]  %s209_s3, 64, %s389_s5, [#allocation3]  }
 0x1dd   :  { %301 = dma.done.wait [#allocation3], 64  }
 0x1de   :  { %302 = vsyncadd [#allocation3], 4294967232 }
 0x1df   :  { %215 = vsyncpa [#allocation3], 1 }

</bundles_post_ra>
